<compile_context>
chip_gen: v7x
topology: tpu7x:2x2x1
jax: 0.10.0
libtpu: 0.0.40
codegen_flags: <defaults>
</compile_context>

<pallas_src>
import jax
import jax.numpy as jnp
from jax.experimental import pallas as pl
from jax.experimental.pallas import tpu as pltpu


def _pick_tile(dim, max_tile, quantum):
    """Largest multiple of `quantum` that divides `dim` and is <= max_tile,
    or `dim` itself when it already fits / nothing divides (no tiling)."""
    if dim <= max_tile:
        return dim
    t = (max_tile // quantum) * quantum
    while t >= quantum:
        if dim % t == 0:
            return t
        t -= quantum
    return dim


def nsp_head_kernel(x_ref, wp_ref, bp_ref, wc_ref, bc_ref, o_ref, acc_ref):
    """K-tiled pooler matmul (bf16 MXU, f32 accumulate) -> tanh -> classifier."""
    k = pl.program_id(1)

    @pl.when(k == 0)
    def _init():
        acc_ref[...] = jnp.zeros_like(acc_ref)

    # Partial pooler product for this K slice: [tb, tk] @ [tk, H] -> f32 acc.
    acc_ref[...] += jnp.dot(x_ref[...], wp_ref[...],
                            preferred_element_type=jnp.float32)

    @pl.when(k == pl.num_programs(1) - 1)
    def _finalize():
        # Bias add + tanh in f32 (v5e has no bf16 VPU/EUP path).
        pooled = jnp.tanh(acc_ref[...] + bp_ref[...])
        # Classifier matmul in bf16 on the MXU, f32 accumulation, f32 bias add.
        logits = jnp.dot(pooled.astype(wc_ref.dtype), wc_ref[...],
                         preferred_element_type=jnp.float32)
        o_ref[...] = (logits + bc_ref[...]).astype(o_ref.dtype)


def electra_nsp_head(seq_out, w_pool, b_pool, w_cls, b_cls):
    """seq_out: [B, S, H] backbone sequence output (bf16 preferred).
    w_pool: [H, H] bf16 (in, out); b_pool: [1, H] f32.
    w_cls:  [H, Cp] bf16, lane-padded to Cp (multiple of 128); b_cls: [1, Cp] f32.
    Returns [B, Cp] f32 logits (caller slices [:, :num_classes])."""
    B, S, H = seq_out.shape
    Cp = w_cls.shape[1]

    tb = _pick_tile(B, 256, 8)      # batch tile (sublane dim)
    tk = _pick_tile(H, 512, 128)    # contraction tile (lane-aligned)
    nb, nk = B // tb, H // tk

    if H % 128 == 0:
        # Fused first-token gather: contiguous [B,S,H] -> [B,S*H] reshape is a
        # bitcast; the first H lanes of each row are exactly token 0, and the
        # K grid only indexes blocks inside [0, H), so the rest of the sequence
        # is never DMA'd.
        x2d = seq_out.reshape(B, S * H)
    else:
        # TODO(synk): fused gather needs a lane-aligned (128-multiple) hidden
        # size; fall back to an XLA slice (one extra [B,H] HBM round trip).
        x2d = seq_out[:, 0, :]

    cost = pl.CostEstimate(
        flops=2 * B * H * H + 2 * B * H * Cp,
        transcendentals=B * H,
        bytes_accessed=(B * H * x2d.dtype.itemsize
                        + w_pool.size * w_pool.dtype.itemsize
                        + b_pool.size * b_pool.dtype.itemsize
                        + w_cls.size * w_cls.dtype.itemsize
                        + b_cls.size * b_cls.dtype.itemsize
                        + B * Cp * 4),
    )

    return pl.pallas_call(
        nsp_head_kernel,
        out_shape=jax.ShapeDtypeStruct((B, Cp), jnp.float32),
        grid_spec=pltpu.PrefetchScalarGridSpec(
            num_scalar_prefetch=0,
            grid=(nb, nk),                                    # reduction axis last
            in_specs=[
                pl.BlockSpec((tb, tk), lambda b, k: (b, k)),  # first-token acts
                pl.BlockSpec((tk, H), lambda b, k: (k, 0)),   # pooler W, streamed over K
                pl.BlockSpec((1, H), lambda b, k: (0, 0)),    # pooler bias, resident
                pl.BlockSpec((H, Cp), lambda b, k: (0, 0)),   # classifier W, resident
                pl.BlockSpec((1, Cp), lambda b, k: (0, 0)),   # classifier bias, resident
            ],
            out_specs=pl.BlockSpec((tb, Cp), lambda b, k: (b, 0)),
            scratch_shapes=[pltpu.VMEM((tb, H), jnp.float32)],  # f32 pooler accumulator
        ),
        compiler_params=pltpu.CompilerParams(
            dimension_semantics=("parallel", "arbitrary"),    # batch across TCs on v7x
            vmem_limit_bytes=32 * 1024 * 1024,                # fits v5e/v7x scoped VMEM
        ),
        cost_estimate=cost,
    )(x2d, w_pool, b_pool, w_cls, b_cls)


def make_nsp_params(key, hidden_size, num_classes, dtype=jnp.bfloat16):
    """Deterministic init with nn.Linear shapes; weights pre-transposed to
    [in, out] and stored bf16 (MXU operands), biases kept f32, classifier
    zero-padded to a 128-lane width."""
    k_wp, k_bp, k_wc, k_bc = jax.random.split(key, 4)
    cp = max(128, ((num_classes + 127) // 128) * 128)
    w_pool = jax.random.normal(k_wp, (hidden_size, hidden_size), jnp.float32) * 0.02
    b_pool = jax.random.normal(k_bp, (1, hidden_size), jnp.float32) * 0.02
    w_cls = jax.random.normal(k_wc, (hidden_size, num_classes), jnp.float32) * 0.02
    b_cls = jax.random.normal(k_bc, (1, num_classes), jnp.float32) * 0.02
    w_cls_p = jnp.zeros((hidden_size, cp), jnp.float32).at[:, :num_classes].set(w_cls)
    b_cls_p = jnp.zeros((1, cp), jnp.float32).at[:, :num_classes].set(b_cls)
    return {
        "w_pool": w_pool.astype(dtype),
        "b_pool": b_pool,            # f32
        "w_cls": w_cls_p.astype(dtype),
        "b_cls": b_cls_p,            # f32
        "num_classes": num_classes,
    }


def gen_attention_mask(token_ids, valid_length):
    """JAX equivalent of ElectraBertNSP.gen_attention_mask (backbone glue)."""
    S = token_ids.shape[1]
    pos = jnp.arange(S)[None, :]
    return (pos < valid_length[:, None]).astype(jnp.float32)


def electra_bert_nsp_forward(token_ids, valid_length, segment_ids,
                             backbone_seq_out, params):
    """Mirrors ElectraBertNSP.forward (dr_rate=None -> no dropout)."""
    attention_mask = gen_attention_mask(token_ids, valid_length)  # noqa: F841
    # TODO(synk): `electra_bert` is an injected external nn.Module with no
    # definition in the spec; `backbone_seq_out` stands in for output[0].
    num_classes = params["num_classes"]
    logits_padded = electra_nsp_head(
        backbone_seq_out.astype(params["w_pool"].dtype),
        params["w_pool"], params["b_pool"], params["w_cls"], params["b_cls"])
    # TODO(synk): dr_rate=None in the reference -> no dropout branch emitted.
    return logits_padded[:, :num_classes]


if __name__ == "__main__":
    B, S, H, C = 2, 8, 128, 2   # small shapes; H lane-aligned for the fused gather

    key = jax.random.PRNGKey(0)
    k_seq, k_par, k_tok = jax.random.split(key, 3)

    # Synthetic backbone sequence output (stand-in for electra_bert(...)[0]).
    backbone_seq_out = jax.random.normal(k_seq, (B, S, H), jnp.float32)
    params = make_nsp_params(k_par, H, C)

    token_ids = jax.random.randint(k_tok, (B, S), 0, 1000, dtype=jnp.int32)
    valid_length = jnp.array([5, 8], dtype=jnp.int32)
    segment_ids = jnp.zeros((B, S), dtype=jnp.int32)

    logits = electra_bert_nsp_forward(token_ids, valid_length, segment_ids,
                                      backbone_seq_out, params)
    jax.block_until_ready(logits)

    # Pure-JAX f32 reference on the same bf16-rounded operands.
    x0 = backbone_seq_out[:, 0, :].astype(jnp.bfloat16).astype(jnp.float32)
    wp = params["w_pool"].astype(jnp.float32)
    wc = params["w_cls"].astype(jnp.float32)[:, :C]
    bc = params["b_cls"][:, :C]
    pooled = jnp.tanh(jnp.dot(x0, wp, precision=jax.lax.Precision.HIGHEST)
                      + params["b_pool"])
    pooled = pooled.astype(jnp.bfloat16).astype(jnp.float32)  # kernel rounds before cls matmul
    ref = jnp.dot(pooled, wc, precision=jax.lax.Precision.HIGHEST) + bc

    assert logits.shape == (B, C)
    assert jnp.allclose(logits, ref, atol=2e-3, rtol=2e-3), (
        float(jnp.max(jnp.abs(logits - ref))))

    print("KERNEL_OK")
</pallas_src>

<mosaic_0001>
module attributes {stable_mosaic.version = 11 : i64} {
  func.func @nsp_head_kernel(%arg0: i32, %arg1: i32, %arg2: memref<2x128xbf16, #tpu.memory_space<vmem>>, %arg3: memref<128x128xbf16, #tpu.memory_space<vmem>>, %arg4: memref<1x128xf32, #tpu.memory_space<vmem>>, %arg5: memref<128x128xbf16, #tpu.memory_space<vmem>>, %arg6: memref<1x128xf32, #tpu.memory_space<vmem>>, %arg7: memref<2x128xf32, #tpu.memory_space<vmem>>, %arg8: memref<2x128xf32, #tpu.memory_space<vmem>>) attributes {dimension_semantics = [#tpu.dimension_semantics<parallel>, #tpu.dimension_semantics<arbitrary>], iteration_bounds = array<i64: 1, 1>, scalar_prefetch = 0 : i64, scratch_operands = 1 : i64, tpu.core_type = #tpu.core_type<tc>, window_params = [{transform_indices = @transform_0, window_bounds = array<i64: 2, 128>}, {transform_indices = @transform_1, window_bounds = array<i64: 128, 128>}, {pipeline_mode = #tpu.pipeline_mode<synchronous>, transform_indices = @transform_2, window_bounds = array<i64: 1, 128>}, {pipeline_mode = #tpu.pipeline_mode<synchronous>, transform_indices = @transform_3, window_bounds = array<i64: 128, 128>}, {pipeline_mode = #tpu.pipeline_mode<synchronous>, transform_indices = @transform_4, window_bounds = array<i64: 1, 128>}, {transform_indices = @transform_5, window_bounds = array<i64: 2, 128>}]} {
    %c0_i32 = arith.constant 0 : i32
    %0 = arith.cmpi eq, %arg1, %c0_i32 : i32
    %1 = arith.extui %0 : i1 to i32
    %c0_i32_0 = arith.constant 0 : i32
    %2 = arith.cmpi ne, %1, %c0_i32_0 : i32
    scf.if %2 {
      %cst_10 = arith.constant 0.000000e+00 : f32
      %12 = vector.broadcast %cst_10 : f32 to vector<2x128xf32>
      %c0_11 = arith.constant 0 : index
      %c0_12 = arith.constant 0 : index
      %13 = vector.load %arg8[%c0_11, %c0_12] : memref<2x128xf32, #tpu.memory_space<vmem>>, vector<2x128xf32>
      tpu.vector_store %arg8[%c0_11, %c0_12], %12 {strides = array<i32>} : memref<2x128xf32, #tpu.memory_space<vmem>>, vector<2x128xf32>,
    } else {
    }
    %c0 = arith.constant 0 : index
    %c0_1 = arith.constant 0 : index
    %3 = vector.load %arg8[%c0, %c0_1] : memref<2x128xf32, #tpu.memory_space<vmem>>, vector<2x128xf32>
    %c0_2 = arith.constant 0 : index
    %c0_3 = arith.constant 0 : index
    %4 = vector.load %arg2[%c0_2, %c0_3] : memref<2x128xbf16, #tpu.memory_space<vmem>>, vector<2x128xbf16>
    %c0_4 = arith.constant 0 : index
    %c0_5 = arith.constant 0 : index
    %5 = vector.load %arg3[%c0_4, %c0_5] : memref<128x128xbf16, #tpu.memory_space<vmem>>, vector<128x128xbf16>
    %cst = arith.constant dense<0.000000e+00> : vector<2x128xf32>
    %6 = tpu.matmul %4, %5, %cst {dimension_numbers = #tpu.dot_dimension_numbers<[1], [0], [0], [1], [0, 0, 1, 1], [], []>} : vector<2x128xbf16>, vector<128x128xbf16>, vector<2x128xf32> -> vector<2x128xf32>
    %7 = arith.addf %3, %6 : vector<2x128xf32>
    %c0_6 = arith.constant 0 : index
    %c0_7 = arith.constant 0 : index
    %8 = vector.load %arg8[%c0_6, %c0_7] : memref<2x128xf32, #tpu.memory_space<vmem>>, vector<2x128xf32>
    tpu.vector_store %arg8[%c0_6, %c0_7], %7 {strides = array<i32>} : memref<2x128xf32, #tpu.memory_space<vmem>>, vector<2x128xf32>,
    %c0_i32_8 = arith.constant 0 : i32
    %9 = arith.cmpi eq, %arg1, %c0_i32_8 : i32
    %10 = arith.extui %9 : i1 to i32
    %c0_i32_9 = arith.constant 0 : i32
    %11 = arith.cmpi ne, %10, %c0_i32_9 : i32
    scf.if %11 {
      %c0_10 = arith.constant 0 : index
      %c0_11 = arith.constant 0 : index
      %12 = vector.load %arg8[%c0_10, %c0_11] : memref<2x128xf32, #tpu.memory_space<vmem>>, vector<2x128xf32>
      %c0_12 = arith.constant 0 : index
      %c0_13 = arith.constant 0 : index
      %13 = vector.load %arg4[%c0_12, %c0_13] : memref<1x128xf32, #tpu.memory_space<vmem>>, vector<1x128xf32>
      %14 = vector.broadcast %13 : vector<1x128xf32> to vector<2x128xf32>
      %15 = arith.addf %12, %14 : vector<2x128xf32>
      %16 = math.tanh %15 : vector<2x128xf32>
      %17 = arith.truncf %16 : vector<2x128xf32> to vector<2x128xbf16>
      %c0_14 = arith.constant 0 : index
      %c0_15 = arith.constant 0 : index
      %18 = vector.load %arg5[%c0_14, %c0_15] : memref<128x128xbf16, #tpu.memory_space<vmem>>, vector<128x128xbf16>
      %cst_16 = arith.constant dense<0.000000e+00> : vector<2x128xf32>
      %19 = tpu.matmul %17, %18, %cst_16 {dimension_numbers = #tpu.dot_dimension_numbers<[1], [0], [0], [1], [0, 0, 1, 1], [], []>} : vector<2x128xbf16>, vector<128x128xbf16>, vector<2x128xf32> -> vector<2x128xf32>
      %c0_17 = arith.constant 0 : index
      %c0_18 = arith.constant 0 : index
      %20 = vector.load %arg6[%c0_17, %c0_18] : memref<1x128xf32, #tpu.memory_space<vmem>>, vector<1x128xf32>
      %21 = vector.broadcast %20 : vector<1x128xf32> to vector<2x128xf32>
      %22 = arith.addf %19, %21 : vector<2x128xf32>
      %c0_19 = arith.constant 0 : index
      %c0_20 = arith.constant 0 : index
      %23 = vector.load %arg7[%c0_19, %c0_20] : memref<2x128xf32, #tpu.memory_space<vmem>>, vector<2x128xf32>
      tpu.vector_store %arg7[%c0_19, %c0_20], %22 {strides = array<i32>} : memref<2x128xf32, #tpu.memory_space<vmem>>, vector<2x128xf32>,
    } else {
    }
    return
  }
  func.func @transform_0(%arg0: i32, %arg1: i32) -> (i32, i32) {
    %c0_i32 = arith.constant 0 : i32
    return %arg0, %arg1 : i32, i32
  }
  func.func @transform_1(%arg0: i32, %arg1: i32) -> (i32, i32) {
    %c0_i32 = arith.constant 0 : i32
    %c0_i32_0 = arith.constant 0 : i32
    return %arg1, %c0_i32 : i32, i32
  }
  func.func @transform_2(%arg0: i32, %arg1: i32) -> (i32, i32) {
    %c0_i32 = arith.constant 0 : i32
    %c0_i32_0 = arith.constant 0 : i32
    %c0_i32_1 = arith.constant 0 : i32
    return %c0_i32, %c0_i32_0 : i32, i32
  }
  func.func @transform_3(%arg0: i32, %arg1: i32) -> (i32, i32) {
    %c0_i32 = arith.constant 0 : i32
    %c0_i32_0 = arith.constant 0 : i32
    %c0_i32_1 = arith.constant 0 : i32
    return %c0_i32, %c0_i32_0 : i32, i32
  }
  func.func @transform_4(%arg0: i32, %arg1: i32) -> (i32, i32) {
    %c0_i32 = arith.constant 0 : i32
    %c0_i32_0 = arith.constant 0 : i32
    %c0_i32_1 = arith.constant 0 : i32
    return %c0_i32, %c0_i32_0 : i32, i32
  }
  func.func @transform_5(%arg0: i32, %arg1: i32) -> (i32, i32) {
    %c0_i32 = arith.constant 0 : i32
    %c0_i32_0 = arith.constant 0 : i32
    return %arg0, %c0_i32 : i32, i32
  }
}

</mosaic_0001>

<bundles_post_ra>
// kernel: tpu_custom_call.1
= control target key start
LH: loop header
LB: loop body
LE: loop exit
PB: predicated region body
PF: predicated region fallthrough
CT: control target
= control target key end

     0   :  { %10 = vsyncpa [#allocation4], 0  ;;  %s613_s0 = inlined_call_operand.hbm [shape: bf16[2,1024], index: 0, kind: input, shape index: {}]   ;;  %s614_s1 = inlined_call_operand.hbm [shape: bf16[128,128], index: 1, kind: input, shape index: {}]   ;;  %s615_s2 = inlined_call_operand.vmem [shape: f32[1,128], index: 2, kind: input, shape index: {}]   ;;  %s616_s3 = inlined_call_operand.hbm [shape: bf16[128,128], index: 3, kind: input, shape index: {}]   ;;  %s617_s4 = inlined_call_operand.vmem [shape: f32[1,128], index: 4, kind: input, shape index: {}]   ;;  %s618_s5 = inlined_call_operand.hbm [shape: f32[2,128], index: 5, kind: output, shape index: {}]  }
   0x1   :  { %11 = vsyncpa [#allocation7], 0 }
   0x2   :  { %12 = vsyncpa [#allocation5], 0  ;;  %s512_s18 = smov [#allocation6]   ;;  %s418_s22 = scalar_lea.hbm %s614_s1, 1024 }
   0x3   :  { %s28_s19 = sshll.u32 %s512_s18, 4  ;;  %p419_p0 = scmp.ne.s32.totalorder %s614_s1, %s418_s22  ;;  %s29_s19 = int_to_ptr.vmem [resolvable:$true] %s28_s19 }
   0x4   :  { %p422_p1 = scmp.lt.u32.totalorder %s418_s22, %s614_s1 }
   0x6   :  { %p424_p2 = pnand %p422_p1, %p419_p0 }
   0x8   :  { %427 = shalt.err (!%p424_p2)
}
   0x9   :  { %s428_s27 = scalar_lea.vmem %s29_s19, 1024  ;;  %p433_p4 = scmp.lt.s32.totalorder %s29_s19, %s29_s19 }
   0xa   :  { %p429_p3 = scmp.ne.s32.totalorder %s29_s19, %s428_s27  ;;  %p434_p5 = scmp.lt.s32.totalorder %s428_s27, %s428_s27 }
   0xc   :  { %p435_p6 = por %p434_p5, %p433_p4 }
   0xe   :  { %p436_p7 = pnand %p435_p6, %p429_p3 }
  0x10   :  { %439 = shalt.err (!%p436_p7)
}
  0x11   :  { %s513_s28 = smov 64   ;;  %s514_s29 = smov 4  }
  0x12   :  { %34 = dma.hbm_to_vmem [thread:$0]  %s614_s1, 1024, %s29_s19, [#allocation7], %s513_s28, %s513_s28, %s514_s29  }
  0x13   :  { %s515_s7 = smov [#allocation3]   ;;  %s516_s9 = smov [#allocation8]  }
  0x14   :  { %s19_s8 = sshll.u32 %s515_s7, 4  ;;  %s42_s10 = sshll.u32 %s516_s9, 4  ;;  %s20_s8 = int_to_ptr.vmem [resolvable:$true] %s19_s8  ;;  %s43_s10 = int_to_ptr.vmem [resolvable:$true] %s42_s10 }
  0x15   :  { %s440_s13 = scalar_lea.hbm %s613_s0, 16  ;;  %s442_s18 = scalar_lea.hbm %s613_s0, 128 }
  0x16   :  { %p441_p8 = scmp.ne.s32.totalorder %s613_s0, %s440_s13  ;;  %p443_p9 = scmp.lt.u32.totalorder %s442_s18, %s440_s13 }
  0x17   :  { %p444_p10 = scmp.lt.u32.totalorder %s440_s13, %s613_s0 }
  0x19   :  { %p445_p11 = por %p444_p10, %p443_p9 }
  0x1b   :  { %p446_p12 = pnand %p445_p11, %p441_p8 }
  0x1d   :  { %449 = shalt.err (!%p446_p12)
}
  0x1e   :  { %s450_s19 = scalar_lea.vmem %s20_s8, 16  ;;  %s454_s21 = scalar_lea.vmem %s20_s8, 32 }
  0x1f   :  { %p451_p13 = scmp.ne.s32.totalorder %s20_s8, %s450_s19  ;;  %p455_p0 = scmp.lt.s32.totalorder %s20_s8, %s20_s8 }
  0x20   :  { %p456_p1 = scmp.lt.s32.totalorder %s454_s21, %s450_s19 }
  0x22   :  { %p457_p2 = por %p456_p1, %p455_p0 }
  0x24   :  { %p458_p3 = pnand %p457_p2, %p451_p13 }
  0x26   :  { %461 = shalt.err (!%p458_p3)
}
  0x27   :  { %22 = dma.hbm_to_vmem [thread:$0]  %s613_s0, 16, %s20_s8, [#allocation4]  }
  0x28   :  { %s462_s26 = scalar_lea.hbm %s616_s3, 1024 }
  0x29   :  { %p463_p4 = scmp.ne.s32.totalorder %s616_s3, %s462_s26  ;;  %p466_p5 = scmp.lt.u32.totalorder %s462_s26, %s616_s3 }
  0x2b   :  { %p468_p6 = pnand %p466_p5, %p463_p4 }
  0x2d   :  { %471 = shalt.err (!%p468_p6)
}
  0x2e   :  { %s472_s9 = scalar_lea.vmem %s43_s10, 1024  ;;  %p477_p8 = scmp.lt.s32.totalorder %s43_s10, %s43_s10 }
  0x2f   :  { %p473_p7 = scmp.ne.s32.totalorder %s43_s10, %s472_s9  ;;  %p478_p9 = scmp.lt.s32.totalorder %s472_s9, %s472_s9 }
  0x31   :  { %p479_p10 = por %p478_p9, %p477_p8 }
  0x33   :  { %p480_p11 = pnand %p479_p10, %p473_p7 }
  0x35   :  { %483 = shalt.err (!%p480_p11)
}
  0x36   :  { %48 = dma.hbm_to_vmem [thread:$0]  %s616_s3, 1024, %s43_s10, [#allocation7], %s513_s28, %s513_s28, %s514_s29  }
  0x37   :  { %506 = dma.done.wait [#allocation4], 16  }
  0x38   :  { %507 = vsyncadd [#allocation4], 4294967280 }
  0x39   :  { %508 = dma.done.wait [#allocation7], 2048  }
  0x3a   :  { %509 = vsyncadd [#allocation7], 4294965248  ;;  %v517_v0 = vmov 0.0   ;;  %vm518_vm0 = vmmov 0   ;;  %v400_v1 = vld [vmem:[#allocation6] sm:$0xff]   ;;  %v401_v2 = vld [vmem:[#allocation6 + $0x8] sm:$0xff]  }
  0x3b   :  { %352 = vmatprep.subr.bf16.mxu0 %v517_v0  ;;  %65 = vst [vmem:[#allocation2] sm:$0x3] %v517_v0  ;;  %368 = vmatprep.mubr.msk.bf16.mxu0 %vm518_vm0, %v517_v0  ;;  %v402_v3 = vld [vmem:[#allocation6 + $0x10] sm:$0xff]   ;;  %v408_v4 = vld [vmem:[#allocation8] sm:$0xff]   ;;  %v403_v5 = vld [vmem:[#allocation6 + $0x18] sm:$0xff]   ;;  %s519_s11 = smov [#allocation9]  }
  0x3c   :  { %372 = vmatprep.subr.bf16.mxu1 %v517_v0  ;;  %388 = vmatprep.mubr.msk.bf16.mxu1 %vm518_vm0, %v517_v0  ;;  %v409_v6 = vld [vmem:[#allocation8 + $0x8] sm:$0xff]   ;;  %v404_v7 = vld [vmem:[#allocation6 + $0x20] sm:$0xff]   ;;  %v406_v9 = vld [vmem:[#allocation6 + $0x30] sm:$0xff]   ;;  %s306_s12 = sshll.u32 %s519_s11, 4  ;;  %s307_s12 = int_to_ptr.vmem [resolvable:$true] %s306_s12 }
  0x3d   :  { %353 = vmatpush3.bf16.msra.mxu0 %v400_v1  ;;  %373 = vmatpush3.bf16.msra.mxu1 %v408_v4  ;;  %v405_v8 = vld [vmem:[#allocation6 + $0x28] sm:$0xff]   ;;  %v407_v10 = vld [vmem:[#allocation6 + $0x38] sm:$0xff]   ;;  %v410_v12 = vld [vmem:[#allocation8 + $0x10] sm:$0xff]   ;;  %p489_p13 = scmp.lt.s32.totalorder %s307_s12, %s307_s12 }
  0x3e   :  { %354 = vmatprep.subr.bf16.mxu0 %v517_v0  ;;  %374 = vmatprep.subr.bf16.mxu1 %v517_v0  ;;  %v67_v11 = vld [vmem:[#allocation3] sm:$0x1]  ;;  %v412_v14 = vld [vmem:[#allocation8 + $0x20] sm:$0xff]   ;;  %v413_v15 = vld [vmem:[#allocation8 + $0x28] sm:$0xff]  }
  0x3f   :  { %v411_v13 = vld [vmem:[#allocation8 + $0x18] sm:$0xff]   ;;  %v414_v16 = vld [vmem:[#allocation8 + $0x30] sm:$0xff]  }
  0x40   :  { %v415_v17 = vld [vmem:[#allocation8 + $0x38] sm:$0xff]  }
  0x41   :  { %355 = vmatpush3.bf16.msra.mxu0 %v401_v2  ;;  %375 = vmatpush3.bf16.msra.mxu1 %v409_v6  ;;  %v324_v24 = vld [vmem:[%s615_s2] ss:$0 sm:$0xff]  ;;  %s484_s2 = scalar_lea.vmem %s307_s12, 32 }
  0x42   :  { %356 = vmatprep.subr.bf16.mxu0 %v517_v0  ;;  %376 = vmatprep.subr.bf16.mxu1 %v517_v0  ;;  %v66_v18 = vld [vmem:[#allocation2] sm:$0x3]  ;;  %p485_p12 = scmp.ne.s32.totalorder %s307_s12, %s484_s2  ;;  %p490_p0 = scmp.lt.s32.totalorder %s484_s2, %s484_s2 }
  0x43   :  { %v325_v29 = vld [vmem:[%s617_s4] ss:$0 sm:$0xff] }
  0x44   :  { %p491_p1 = por %p490_p0, %p489_p13 }
  0x45   :  { %357 = vmatpush3.bf16.msra.mxu0 %v402_v3  ;;  %377 = vmatpush3.bf16.msra.mxu1 %v410_v12 }
  0x46   :  { %358 = vmatprep.subr.bf16.mxu0 %v517_v0  ;;  %378 = vmatprep.subr.bf16.mxu1 %v517_v0  ;;  %p492_p2 = pnand %p491_p1, %p485_p12 }
  0x49   :  { %359 = vmatpush3.bf16.msra.mxu0 %v403_v5  ;;  %379 = vmatpush3.bf16.msra.mxu1 %v411_v13 }
  0x4a   :  { %360 = vmatprep.subr.bf16.mxu0 %v517_v0  ;;  %380 = vmatprep.subr.bf16.mxu1 %v517_v0 }
  0x4d   :  { %361 = vmatpush3.bf16.msra.mxu0 %v404_v7  ;;  %381 = vmatpush3.bf16.msra.mxu1 %v412_v14 }
  0x4e   :  { %362 = vmatprep.subr.bf16.mxu0 %v517_v0  ;;  %382 = vmatprep.subr.bf16.mxu1 %v517_v0 }
  0x51   :  { %363 = vmatpush3.bf16.msra.mxu0 %v405_v8  ;;  %383 = vmatpush3.bf16.msra.mxu1 %v413_v15 }
  0x52   :  { %364 = vmatprep.subr.bf16.mxu0 %v517_v0  ;;  %384 = vmatprep.subr.bf16.mxu1 %v517_v0 }
  0x55   :  { %365 = vmatpush3.bf16.msra.mxu0 %v406_v9  ;;  %385 = vmatpush3.bf16.msra.mxu1 %v414_v16 }
  0x56   :  { %366 = vmatprep.subr.bf16.mxu0 %v517_v0  ;;  %386 = vmatprep.subr.bf16.mxu1 %v517_v0 }
  0x59   :  { %367 = vmatpush3.bf16.msra.mxu0 %v407_v10  ;;  %387 = vmatpush3.bf16.msra.mxu1 %v415_v17 }
  0x5c   :  { %369 = vmatmul.mubr.bf16.vlgmr.msra.gmra.mrb[0].mxu0 %v67_v11 }
 0x12f   :  { %v166_v19 = vpop.f32.mrb[0].mxu0 }
 0x130   :  { %v172_v20 = vadd.f32 %v166_v19, %v66_v18  ;;  %v370_v21 = vpop.f32.mrb[1].mxu0 }
 0x131   :  { %v169_v22 = vpop.f32.mrb[2].mxu0 }
 0x132   :  { %173 = vst [vmem:[#allocation2] sm:$0x3] %v172_v20  ;;  %v371_v23 = vpop.f32.mrb[3].mxu0 }
 0x139   :  { %v177_v25 = vld [vmem:[#allocation2] sm:$0x3] }
 0x13a   :  { %v185_v26 = vadd.f32 %v324_v24, %v177_v25 }
 0x13c   :  { %416 = vtanh.f32 %v185_v26 }
 0x146   :  { %v417_v27 = vpop.eup %416 }
 0x147   :  { %v187_v28 = vpack.c.bf16 %v417_v27, %v417_v27 }
 0x149   :  { %389 = vmatmul.mubr.bf16.vlgmr.msra.gmra.mrb[0].mxu1 %v187_v28 }
 0x21c   :  { %v293_v30 = vpop.f32.mrb[0].mxu1 }
 0x21d   :  { %v294_v31 = vadd.f32 %v325_v29, %v293_v30  ;;  %v390_v32 = vpop.f32.mrb[1].mxu1 }
 0x21e   :  { %v296_v33 = vpop.f32.mrb[2].mxu1 }
 0x21f   :  { %299 = vst [vmem:[#allocation9] sm:$0x3] %v294_v31  ;;  %v391_v34 = vpop.f32.mrb[3].mxu1 }
 0x220   :  { %495 = shalt.err (!%p492_p2)
}
 0x221   :  { %s496_s4 = scalar_lea.hbm %s618_s5, 32 }
 0x222   :  { %p497_p3 = scmp.ne.s32.totalorder %s618_s5, %s496_s4  ;;  %p500_p4 = scmp.lt.u32.totalorder %s496_s4, %s618_s5 }
 0x224   :  { %p502_p5 = pnand %p500_p4, %p497_p3 }
 0x226   :  { %505 = shalt.err (!%p502_p5)
}
 0x227   :  { %309 = dma.vmem_to_hbm [thread:$0]  %s307_s12, 32, %s618_s5, [#allocation5]  }
 0x228   :  { %510 = dma.done.wait [#allocation5], 32  }
 0x229   :  { %511 = vsyncadd [#allocation5], 4294967264 }
 0x22a   :  { %313 = vsyncpa [#allocation4], 1 }
 0x22b   :  { %314 = vsyncpa [#allocation7], 1 }
 0x22c   :  { %315 = vsyncpa [#allocation5], 1 }

</bundles_post_ra>
